<compile_context>
chip_gen: v7x
topology: tpu7x:2x2x1
jax: 0.10.0
libtpu: 0.0.40
codegen_flags: <defaults>
</compile_context>

<pallas_src>
import jax
import jax.numpy as jnp
from jax import lax
from jax.experimental import pallas as pl
from jax.experimental.pallas import tpu as pltpu

_HIGH = jax.lax.Precision.HIGHEST


def _round_up(x, m):
    return (x + m - 1) // m * m


def text_cls_kernel(text_ref, start_ref, end_ref, emb_ref, w_ref, b_ref,
                    out_ref, acc_ref, mask_ref):
    # grid = (bag_tiles, vocab_chunks); vocab chunks are the reduction axis.
    k = pl.program_id(1)
    nv = pl.num_programs(1)
    TV = emb_ref.shape[0]
    BT, T_pad = mask_ref.shape

    # --- init per bag-tile: zero accumulator, build the (BT, T) segment mask once ---
    @pl.when(k == 0)
    def _():
        acc_ref[...] = jnp.zeros_like(acc_ref)
        t_iota = lax.broadcasted_iota(jnp.int32, (BT, T_pad), 1)
        mask_ref[...] = ((t_iota >= start_ref[...]) &
                         (t_iota < end_ref[...])).astype(jnp.float32)

    # --- one-hot of token ids against this vocab chunk (pure VPU compare) ---
    tok = text_ref[...]                                            # (T_pad, 1) int32
    v_iota = lax.broadcasted_iota(jnp.int32, (T_pad, TV), 1) + k * TV
    onehot = (v_iota == tok).astype(jnp.float32)                   # (T_pad, TV)

    # --- two MXU matmuls: per-bag token counts, then weighted embedding sum ---
    # 0/1 and small-integer operands are exact in bf16 -> default precision is exact.
    seg_counts = jnp.dot(mask_ref[...], onehot,
                         preferred_element_type=jnp.float32)       # (BT, TV)
    acc_ref[...] += jnp.dot(seg_counts, emb_ref[...],
                            precision=_HIGH,
                            preferred_element_type=jnp.float32)    # (BT, D_pad)

    # --- finalize: mean pooling + fused FC ---
    @pl.when(k == nv - 1)
    def _():
        counts = (end_ref[...] - start_ref[...]).astype(jnp.float32)   # (BT, 1)
        pooled = acc_ref[...] / jnp.maximum(counts, 1.0)               # empty bag -> 0
        out_ref[...] = (jnp.dot(pooled, w_ref[...],
                                precision=_HIGH,
                                preferred_element_type=jnp.float32)
                        + b_ref[...]).astype(out_ref.dtype)


def text_classification_forward(text, offsets, emb, fc_w, fc_b):
    """text:(T,) int32, offsets:(B,) int32, emb:(V,D), fc_w:(D,C), fc_b:(1,C) -> (B,C)."""
    T = text.shape[0]
    B = offsets.shape[0]
    V, D = emb.shape
    C = fc_w.shape[1]

    LANE, SUB = 128, 8
    T_pad = _round_up(T, LANE)
    D_pad = _round_up(D, LANE)
    C_pad = _round_up(C, LANE)
    TV = min(512, _round_up(V, LANE))          # vocab chunk (lane multiple)
    V_pad = _round_up(V, TV)
    B_sub = _round_up(B, SUB)
    BT = min(B_sub, 128)                       # bag tile (sublane multiple)
    B_pad = _round_up(B_sub, BT)

    # --- host-side padding / layout plumbing (lane-dense everything) ---
    starts = offsets.astype(jnp.int32)
    ends = jnp.concatenate([starts[1:], jnp.array([T], jnp.int32)])
    # Padded bags get start == end == T -> empty mask row -> pooled 0.
    starts_p = jnp.full((B_pad,), T, jnp.int32).at[:B].set(starts).reshape(B_pad, 1)
    ends_p = jnp.full((B_pad,), T, jnp.int32).at[:B].set(ends).reshape(B_pad, 1)

    text_p = jnp.zeros((T_pad, 1), jnp.int32).at[:T, 0].set(text.astype(jnp.int32))
    # TODO(synk): for very large vocabularies, store emb in bf16 to halve HBM traffic
    # (accumulation is already f32); kept f32 to match the reference numerics exactly.
    emb_p = jnp.zeros((V_pad, D_pad), jnp.float32).at[:V, :D].set(emb.astype(jnp.float32))
    w_p = jnp.zeros((D_pad, C_pad), jnp.float32).at[:D, :C].set(fc_w.astype(jnp.float32))
    b_p = jnp.zeros((1, C_pad), jnp.float32).at[:, :C].set(
        fc_b.reshape(1, C).astype(jnp.float32))

    grid = (B_pad // BT, V_pad // TV)

    out = pl.pallas_call(
        text_cls_kernel,
        out_shape=jax.ShapeDtypeStruct((B_pad, C_pad), jnp.float32),
        grid_spec=pltpu.PrefetchScalarGridSpec(
            num_scalar_prefetch=0,
            grid=grid,
            in_specs=[
                pl.BlockSpec((T_pad, 1), lambda i, k: (0, 0)),       # token ids (column)
                pl.BlockSpec((BT, 1), lambda i, k: (i, 0)),          # bag starts
                pl.BlockSpec((BT, 1), lambda i, k: (i, 0)),          # bag ends
                pl.BlockSpec((TV, D_pad), lambda i, k: (k, 0)),      # emb chunk (streamed)
                pl.BlockSpec((D_pad, C_pad), lambda i, k: (0, 0)),   # fc weight
                pl.BlockSpec((1, C_pad), lambda i, k: (0, 0)),       # fc bias
            ],
            out_specs=pl.BlockSpec((BT, C_pad), lambda i, k: (i, 0)),
            scratch_shapes=[
                pltpu.VMEM((BT, D_pad), jnp.float32),   # pooled-sum accumulator
                pltpu.VMEM((BT, T_pad), jnp.float32),   # per-tile segment mask
            ],
        ),
        compiler_params=pltpu.CompilerParams(
            dimension_semantics=("parallel", "arbitrary"),
        ),
    )(text_p, starts_p, ends_p, emb_p, w_p, b_p)

    return out[:B, :C]


def reference_forward(text, offsets, emb, fc_w, fc_b):
    """Plain-JAX reference matching torch EmbeddingBag(mean) + Linear."""
    B = offsets.shape[0]
    T = text.shape[0]
    ends = jnp.concatenate([offsets[1:], jnp.array([T], jnp.int32)])
    rows = emb[text]                                            # (T, D)
    pooled = []
    for b in range(B):
        s, e = int(offsets[b]), int(ends[b])
        cnt = max(e - s, 1)
        pooled.append(rows[s:e].sum(axis=0) / cnt)
    pooled = jnp.stack(pooled)
    return jnp.einsum('bd,dc->bc', pooled, fc_w, precision=_HIGH) + fc_b


if __name__ == "__main__":
    vocab_size = 50
    embed_dim = 32
    num_class = 4

    # Deterministic parameter init mirroring init_weights():
    #   embedding.weight ~ U(-0.5, 0.5), fc.weight ~ U(-0.5, 0.5), fc.bias = 0
    key = jax.random.PRNGKey(0)
    k_emb, k_w, k_text = jax.random.split(key, 3)
    initrange = 0.5
    emb = jax.random.uniform(k_emb, (vocab_size, embed_dim), jnp.float32,
                             -initrange, initrange)
    fc_w = jax.random.uniform(k_w, (embed_dim, num_class), jnp.float32,
                              -initrange, initrange)   # torch weight (C,D) stored as (D,C)
    fc_b = jnp.zeros((1, num_class), jnp.float32)

    # Example batch: 4 bags of token ids, concatenated, with offsets.
    batch = 4
    total_tokens = 16
    text = jax.random.randint(k_text, (total_tokens,), 0, vocab_size, jnp.int32)
    offsets = jnp.array([0, 3, 7, 12], jnp.int32)      # bag lengths 3,4,5,4

    logits = text_classification_forward(text, offsets, emb, fc_w, fc_b)
    jax.block_until_ready(logits)

    ref = reference_forward(text, offsets, emb, fc_w, fc_b)
    assert logits.shape == (batch, num_class)
    assert jnp.allclose(logits, ref, atol=1e-4, rtol=1e-4), (logits, ref)

    print("KERNEL_OK")
</pallas_src>

<mosaic_0001>
module attributes {stable_mosaic.version = 11 : i64} {
  func.func @text_cls_kernel(%arg0: i32, %arg1: i32, %arg2: memref<128x1xi32, #tpu.memory_space<vmem>>, %arg3: memref<8x1xi32, #tpu.memory_space<vmem>>, %arg4: memref<8x1xi32, #tpu.memory_space<vmem>>, %arg5: memref<128x128xf32, #tpu.memory_space<vmem>>, %arg6: memref<128x128xf32, #tpu.memory_space<vmem>>, %arg7: memref<1x128xf32, #tpu.memory_space<vmem>>, %arg8: memref<8x128xf32, #tpu.memory_space<vmem>>, %arg9: memref<8x128xf32, #tpu.memory_space<vmem>>, %arg10: memref<8x128xf32, #tpu.memory_space<vmem>>) attributes {dimension_semantics = [#tpu.dimension_semantics<parallel>, #tpu.dimension_semantics<arbitrary>], iteration_bounds = array<i64: 1, 1>, scalar_prefetch = 0 : i64, scratch_operands = 2 : i64, tpu.core_type = #tpu.core_type<tc>, window_params = [{pipeline_mode = #tpu.pipeline_mode<synchronous>, transform_indices = @transform_0, window_bounds = array<i64: 128, 1>}, {transform_indices = @transform_1, window_bounds = array<i64: 8, 1>}, {transform_indices = @transform_2, window_bounds = array<i64: 8, 1>}, {transform_indices = @transform_3, window_bounds = array<i64: 128, 128>}, {pipeline_mode = #tpu.pipeline_mode<synchronous>, transform_indices = @transform_4, window_bounds = array<i64: 128, 128>}, {pipeline_mode = #tpu.pipeline_mode<synchronous>, transform_indices = @transform_5, window_bounds = array<i64: 1, 128>}, {transform_indices = @transform_6, window_bounds = array<i64: 8, 128>}]} {
    %c0_i32 = arith.constant 0 : i32
    %0 = arith.cmpi eq, %arg1, %c0_i32 : i32
    %1 = arith.extui %0 : i1 to i32
    %c0_i32_0 = arith.constant 0 : i32
    %2 = arith.cmpi ne, %1, %c0_i32_0 : i32
    scf.if %2 {
      %cst_13 = arith.constant 0.000000e+00 : f32
      %22 = vector.broadcast %cst_13 : f32 to vector<8x128xf32>
      %c0_14 = arith.constant 0 : index
      %c0_15 = arith.constant 0 : index
      %23 = vector.load %arg9[%c0_14, %c0_15] : memref<8x128xf32, #tpu.memory_space<vmem>>, vector<8x128xf32>
      tpu.vector_store %arg9[%c0_14, %c0_15], %22 {strides = array<i32>} : memref<8x128xf32, #tpu.memory_space<vmem>>, vector<8x128xf32>,
      %24 = tpu.iota {dimensions = array<i32: 1>} : vector<8x128xi32>
      %c0_16 = arith.constant 0 : index
      %c0_17 = arith.constant 0 : index
      %25 = vector.load %arg3[%c0_16, %c0_17] : memref<8x1xi32, #tpu.memory_space<vmem>>, vector<8x1xi32>
      %26 = vector.broadcast %25 : vector<8x1xi32> to vector<8x128xi32>
      %27 = arith.cmpi sge, %24, %26 : vector<8x128xi32>
      %c0_18 = arith.constant 0 : index
      %c0_19 = arith.constant 0 : index
      %28 = vector.load %arg4[%c0_18, %c0_19] : memref<8x1xi32, #tpu.memory_space<vmem>>, vector<8x1xi32>
      %29 = vector.broadcast %28 : vector<8x1xi32> to vector<8x128xi32>
      %30 = arith.cmpi slt, %24, %29 : vector<8x128xi32>
      %31 = arith.andi %27, %30 : vector<8x128xi1>
      %32 = arith.extui %31 : vector<8x128xi1> to vector<8x128xi32>
      %33 = arith.sitofp %32 : vector<8x128xi32> to vector<8x128xf32>
      %c0_20 = arith.constant 0 : index
      %c0_21 = arith.constant 0 : index
      %34 = vector.load %arg10[%c0_20, %c0_21] : memref<8x128xf32, #tpu.memory_space<vmem>>, vector<8x128xf32>
      tpu.vector_store %arg10[%c0_20, %c0_21], %33 {strides = array<i32>} : memref<8x128xf32, #tpu.memory_space<vmem>>, vector<8x128xf32>,
    } else {
    }
    %c0 = arith.constant 0 : index
    %c0_1 = arith.constant 0 : index
    %3 = vector.load %arg2[%c0, %c0_1] : memref<128x1xi32, #tpu.memory_space<vmem>>, vector<128x1xi32>
    %4 = tpu.iota {dimensions = array<i32: 1>} : vector<128x128xi32>
    %c128_i32 = arith.constant 128 : i32
    %5 = arith.muli %arg1, %c128_i32 : i32
    %6 = vector.broadcast %5 : i32 to vector<128x128xi32>
    %7 = arith.addi %4, %6 : vector<128x128xi32>
    %8 = vector.broadcast %3 : vector<128x1xi32> to vector<128x128xi32>
    %9 = arith.cmpi eq, %7, %8 : vector<128x128xi32>
    %10 = arith.extui %9 : vector<128x128xi1> to vector<128x128xi32>
    %11 = arith.sitofp %10 : vector<128x128xi32> to vector<128x128xf32>
    %c0_2 = arith.constant 0 : index
    %c0_3 = arith.constant 0 : index
    %12 = vector.load %arg10[%c0_2, %c0_3] : memref<8x128xf32, #tpu.memory_space<vmem>>, vector<8x128xf32>
    %cst = arith.constant dense<0.000000e+00> : vector<8x128xf32>
    %13 = tpu.matmul %12, %11, %cst {dimension_numbers = #tpu.dot_dimension_numbers<[1], [0], [0], [1], [0, 0, 1, 1], [], []>} : vector<8x128xf32>, vector<128x128xf32>, vector<8x128xf32> -> vector<8x128xf32>
    %c0_4 = arith.constant 0 : index
    %c0_5 = arith.constant 0 : index
    %14 = vector.load %arg9[%c0_4, %c0_5] : memref<8x128xf32, #tpu.memory_space<vmem>>, vector<8x128xf32>
    %c0_6 = arith.constant 0 : index
    %c0_7 = arith.constant 0 : index
    %15 = vector.load %arg5[%c0_6, %c0_7] : memref<128x128xf32, #tpu.memory_space<vmem>>, vector<128x128xf32>
    %cst_8 = arith.constant dense<0.000000e+00> : vector<8x128xf32>
    %16 = tpu.matmul %13, %15, %cst_8 {dimension_numbers = #tpu.dot_dimension_numbers<[1], [0], [0], [1], [0, 0, 1, 1], [], []>, precision = #tpu.contract_precision<fp32>} : vector<8x128xf32>, vector<128x128xf32>, vector<8x128xf32> -> vector<8x128xf32>
    %17 = arith.addf %14, %16 : vector<8x128xf32>
    %c0_9 = arith.constant 0 : index
    %c0_10 = arith.constant 0 : index
    %18 = vector.load %arg9[%c0_9, %c0_10] : memref<8x128xf32, #tpu.memory_space<vmem>>, vector<8x128xf32>
    tpu.vector_store %arg9[%c0_9, %c0_10], %17 {strides = array<i32>} : memref<8x128xf32, #tpu.memory_space<vmem>>, vector<8x128xf32>,
    %c0_i32_11 = arith.constant 0 : i32
    %19 = arith.cmpi eq, %arg1, %c0_i32_11 : i32
    %20 = arith.extui %19 : i1 to i32
    %c0_i32_12 = arith.constant 0 : i32
    %21 = arith.cmpi ne, %20, %c0_i32_12 : i32
    scf.if %21 {
      %c0_13 = arith.constant 0 : index
      %c0_14 = arith.constant 0 : index
      %22 = vector.load %arg4[%c0_13, %c0_14] : memref<8x1xi32, #tpu.memory_space<vmem>>, vector<8x1xi32>
      %c0_15 = arith.constant 0 : index
      %c0_16 = arith.constant 0 : index
      %23 = vector.load %arg3[%c0_15, %c0_16] : memref<8x1xi32, #tpu.memory_space<vmem>>, vector<8x1xi32>
      %24 = arith.subi %22, %23 : vector<8x1xi32>
      %25 = arith.sitofp %24 : vector<8x1xi32> to vector<8x1xf32>
      %c0_17 = arith.constant 0 : index
      %c0_18 = arith.constant 0 : index
      %26 = vector.load %arg9[%c0_17, %c0_18] : memref<8x128xf32, #tpu.memory_space<vmem>>, vector<8x128xf32>
      %cst_19 = arith.constant 1.000000e+00 : f32
      %27 = vector.broadcast %cst_19 : f32 to vector<8x1xf32>
      %28 = arith.maximumf %25, %27 : vector<8x1xf32>
      %29 = vector.broadcast %28 : vector<8x1xf32> to vector<8x128xf32>
      %30 = arith.divf %26, %29 : vector<8x128xf32>
      %c0_20 = arith.constant 0 : index
      %c0_21 = arith.constant 0 : index
      %31 = vector.load %arg6[%c0_20, %c0_21] : memref<128x128xf32, #tpu.memory_space<vmem>>, vector<128x128xf32>
      %cst_22 = arith.constant dense<0.000000e+00> : vector<8x128xf32>
      %32 = tpu.matmul %30, %31, %cst_22 {dimension_numbers = #tpu.dot_dimension_numbers<[1], [0], [0], [1], [0, 0, 1, 1], [], []>, precision = #tpu.contract_precision<fp32>} : vector<8x128xf32>, vector<128x128xf32>, vector<8x128xf32> -> vector<8x128xf32>
      %c0_23 = arith.constant 0 : index
      %c0_24 = arith.constant 0 : index
      %33 = vector.load %arg7[%c0_23, %c0_24] : memref<1x128xf32, #tpu.memory_space<vmem>>, vector<1x128xf32>
      %34 = vector.broadcast %33 : vector<1x128xf32> to vector<8x128xf32>
      %35 = arith.addf %32, %34 : vector<8x128xf32>
      %c0_25 = arith.constant 0 : index
      %c0_26 = arith.constant 0 : index
      %36 = vector.load %arg8[%c0_25, %c0_26] : memref<8x128xf32, #tpu.memory_space<vmem>>, vector<8x128xf32>
      tpu.vector_store %arg8[%c0_25, %c0_26], %35 {strides = array<i32>} : memref<8x128xf32, #tpu.memory_space<vmem>>, vector<8x128xf32>,
    } else {
    }
    return
  }
  func.func @transform_0(%arg0: i32, %arg1: i32) -> (i32, i32) {
    %c0_i32 = arith.constant 0 : i32
    %c0_i32_0 = arith.constant 0 : i32
    %c0_i32_1 = arith.constant 0 : i32
    return %c0_i32, %c0_i32_0 : i32, i32
  }
  func.func @transform_1(%arg0: i32, %arg1: i32) -> (i32, i32) {
    %c0_i32 = arith.constant 0 : i32
    %c0_i32_0 = arith.constant 0 : i32
    return %arg0, %c0_i32 : i32, i32
  }
  func.func @transform_2(%arg0: i32, %arg1: i32) -> (i32, i32) {
    %c0_i32 = arith.constant 0 : i32
    %c0_i32_0 = arith.constant 0 : i32
    return %arg0, %c0_i32 : i32, i32
  }
  func.func @transform_3(%arg0: i32, %arg1: i32) -> (i32, i32) {
    %c0_i32 = arith.constant 0 : i32
    %c0_i32_0 = arith.constant 0 : i32
    return %arg1, %c0_i32 : i32, i32
  }
  func.func @transform_4(%arg0: i32, %arg1: i32) -> (i32, i32) {
    %c0_i32 = arith.constant 0 : i32
    %c0_i32_0 = arith.constant 0 : i32
    %c0_i32_1 = arith.constant 0 : i32
    return %c0_i32, %c0_i32_0 : i32, i32
  }
  func.func @transform_5(%arg0: i32, %arg1: i32) -> (i32, i32) {
    %c0_i32 = arith.constant 0 : i32
    %c0_i32_0 = arith.constant 0 : i32
    %c0_i32_1 = arith.constant 0 : i32
    return %c0_i32, %c0_i32_0 : i32, i32
  }
  func.func @transform_6(%arg0: i32, %arg1: i32) -> (i32, i32) {
    %c0_i32 = arith.constant 0 : i32
    %c0_i32_0 = arith.constant 0 : i32
    return %arg0, %c0_i32 : i32, i32
  }
}

</mosaic_0001>

<bundles_post_ra>
// kernel: tpu_custom_call.1
= control target key start
LH: loop header
LB: loop body
LE: loop exit
PB: predicated region body
PF: predicated region fallthrough
CT: control target
= control target key end

     0   :  { %11 = vsyncpa [#allocation5], 0  ;;  %s3426_s0 = inlined_call_operand.vmem [shape: s32[128,1], index: 0, kind: input, shape index: {}]   ;;  %s3427_s1 = inlined_call_operand.vmem [shape: s32[8,1], index: 1, kind: input, shape index: {}]   ;;  %s3428_s2 = inlined_call_operand.vmem [shape: s32[8,1], index: 2, kind: input, shape index: {}]   ;;  %s3429_s3 = inlined_call_operand.vmem [shape: f32[128,128], index: 3, kind: input, shape index: {}]   ;;  %s3430_s4 = inlined_call_operand.hbm [shape: f32[128,128], index: 4, kind: input, shape index: {}]   ;;  %s3431_s5 = inlined_call_operand.vmem [shape: f32[1,128], index: 5, kind: input, shape index: {}]   ;;  %s3432_s6 = inlined_call_operand.hbm [shape: f32[8,128], index: 6, kind: output, shape index: {}]  }
   0x1   :  { %12 = vsyncpa [#allocation6], 0  ;;  %s2709_s21 = smov [#allocation4]   ;;  %s2661_s25 = scalar_lea.hbm %s3430_s4, 2048 }
   0x2   :  { %s26_s22 = sshll.u32 %s2709_s21, 4  ;;  %p2662_p0 = scmp.ne.s32.totalorder %s3430_s4, %s2661_s25  ;;  %s27_s22 = int_to_ptr.vmem [resolvable:$true] %s26_s22 }
   0x3   :  { %p2665_p1 = scmp.lt.u32.totalorder %s2661_s25, %s3430_s4 }
   0x5   :  { %p2667_p2 = pnand %p2665_p1, %p2662_p0 }
   0x7   :  { %2670 = shalt.err (!%p2667_p2)
}
   0x8   :  { %s2671_s30 = scalar_lea.vmem %s27_s22, 2048  ;;  %p2676_p4 = scmp.lt.s32.totalorder %s27_s22, %s27_s22 }
   0x9   :  { %p2672_p3 = scmp.ne.s32.totalorder %s27_s22, %s2671_s30  ;;  %p2677_p5 = scmp.lt.s32.totalorder %s2671_s30, %s2671_s30 }
   0xb   :  { %p2678_p6 = por %p2677_p5, %p2676_p4 }
   0xd   :  { %p2679_p7 = pnand %p2678_p6, %p2672_p3 }
   0xf   :  { %2682 = shalt.err (!%p2679_p7)
}
  0x10   :  { %s2710_s7 = smov 128   ;;  %s2711_s8 = smov 8  }
  0x11   :  { %32 = dma.hbm_to_vmem [thread:$0]  %s3430_s4, 2048, %s27_s22, [#allocation5], %s2710_s7, %s2710_s7, %s2711_s8  }
  0x12   :  { %2705 = dma.done.wait [#allocation5], 2048  }
  0x13   :  { %2706 = vsyncadd [#allocation5], 4294965248  ;;  %v2712_v0 = vmov 0   ;;  %v61_v1 = vld [vmem:[%s3426_s0 + $0x10] sm:$0xff]  ;;  %v59_v2 = vld [vmem:[%s3426_s0] sm:$0xff]  ;;  %v2713_v7 = vmov 0.0|0.0  }
  0x14   :  { %2658 = vset.pattern.permute.xlu1 %v2712_v0  ;;  %2657 = vset.pattern.permute.xlu0 %v2712_v0  ;;  %v62_v3 = vld [vmem:[%s3426_s0 + $0x18] sm:$0xff]  ;;  %v60_v4 = vld [vmem:[%s3426_s0 + $0x8] sm:$0xff]  ;;  %v63_v6 = vld [vmem:[%s3426_s0 + $0x20] sm:$0xff]  ;;  %vm2714_vm0 = vmmov 0   ;;  %v2715_v23 = vmov 0.0   ;;  %s2718_s23 = smov [#allocation7]  }
  0x15   :  { %87 = vperm.xlu1 %2658, %v61_v1   ;;  %81 = vperm.xlu0 %2657, %v59_v2   ;;  %v64_v5 = vld [vmem:[%s3426_s0 + $0x28] sm:$0xff]  ;;  %v66_v8 = vld [vmem:[%s3426_s0 + $0x38] sm:$0xff]  ;;  %v65_v9 = vld [vmem:[%s3426_s0 + $0x30] sm:$0xff]  ;;  %v43_v2 = vlaneseq  ;;  %s1594_s24 = sshll.u32 %s2718_s23, 4  ;;  %s1595_s24 = int_to_ptr.vmem [resolvable:$true] %s1594_s24 }
  0x16   :  { %2314 = vmatprep.subr.bf16.mxu0 %v2713_v7  ;;  %2338 = vmatprep.subr.bf16.mxu1 %v2713_v7  ;;  %v68_v10 = vld [vmem:[%s3426_s0 + $0x48] sm:$0xff]  ;;  %v67_v11 = vld [vmem:[%s3426_s0 + $0x40] sm:$0xff]  ;;  %v70_v12 = vld [vmem:[%s3426_s0 + $0x58] sm:$0xff]  ;;  %s2683_s25 = scalar_lea.vmem %s1595_s24, 128  ;;  %p2688_p9 = scmp.lt.s32.totalorder %s1595_s24, %s1595_s24 }
  0x17   :  { %v69_v13 = vld [vmem:[%s3426_s0 + $0x50] sm:$0xff]  ;;  %v72_v14 = vld [vmem:[%s3426_s0 + $0x68] sm:$0xff]  ;;  %v71_v15 = vld [vmem:[%s3426_s0 + $0x60] sm:$0xff]  ;;  %1891 = vmatprep.mubr.msk.f32.mxu0 %vm2714_vm0, %v2715_v23  ;;  %1926 = vmatprep.mubr.msk.f32.mxu1 %vm2714_vm0, %v2715_v23  ;;  %p2684_p8 = scmp.ne.s32.totalorder %s1595_s24, %s2683_s25  ;;  %p2689_p10 = scmp.lt.s32.totalorder %s2683_s25, %s2683_s25 }
  0x18   :  { %v50_v16 = vld [vmem:[%s3428_s2] sm:$0xff]  ;;  %v74_v19 = vld [vmem:[%s3426_s0 + $0x78] sm:$0xff]  ;;  %v73_v20 = vld [vmem:[%s3426_s0 + $0x70] sm:$0xff] }
  0x19   :  { %90 = vperm.xlu1 %2658, %v62_v3   ;;  %84 = vperm.xlu0 %2657, %v60_v4   ;;  %v45_v17 = vld [vmem:[%s3427_s1] sm:$0xff]  ;;  %v249_v25 = vld [vmem:[%s3429_s3 + $0x8] sm:$0xff]  ;;  %v250_v26 = vld [vmem:[%s3429_s3 + $0x10] sm:$0xff]  ;;  %p2690_p11 = por %p2689_p10, %p2688_p9 }
  0x1a   :  { %v912_v18 = vsub.s32 %v50_v16, %v45_v17  ;;  %v248_v24 = vld [vmem:[%s3429_s3] sm:$0xff]  ;;  %v268_v28 = vand.u32 4294901760, %v249_v25  ;;  %v251_v29 = vld [vmem:[%s3429_s3 + $0x18] sm:$0xff]  ;;  %v271_v30 = vand.u32 4294901760, %v250_v26  ;;  %v253_v32 = vld [vmem:[%s3429_s3 + $0x28] sm:$0xff] }
  0x1b   :  { %v265_v27 = vand.u32 4294901760, %v248_v24  ;;  %v252_v31 = vld [vmem:[%s3429_s3 + $0x20] sm:$0xff]  ;;  %v274_v33 = vand.u32 4294901760, %v251_v29  ;;  %v280_v35 = vand.u32 4294901760, %v253_v32  ;;  %v254_v36 = vld [vmem:[%s3429_s3 + $0x30] sm:$0xff]  ;;  %v255_v37 = vld [vmem:[%s3429_s3 + $0x38] sm:$0xff]  ;;  %p2691_p12 = pnand %p2690_p11, %p2684_p8 }
  0x1c   :  { %v913_v21 = vcvt.s32.f32 %v912_v18  ;;  %v277_v34 = vand.u32 4294901760, %v252_v31  ;;  %v256_v38 = vld [vmem:[%s3429_s3 + $0x40] sm:$0xff]  ;;  %v2857_v41 = vsub.f32 %v249_v25, %v268_v28  ;;  %v2859_v42 = vsub.f32 %v250_v26, %v271_v30  ;;  %v257_v43 = vld [vmem:[%s3429_s3 + $0x48] sm:$0xff]  ;;  %v258_v44 = vld [vmem:[%s3429_s3 + $0x50] sm:$0xff] }
  0x1d   :  { %96 = vperm.xlu1 %2658, %v64_v5   ;;  %93 = vperm.xlu0 %2657, %v63_v6   ;;  %v2853_v39 = vpack.c.bf16 %v268_v28, %v265_v27  ;;  %v2855_v40 = vsub.f32 %v248_v24, %v265_v27  ;;  %v2867_v45 = vpack.c.bf16 %v274_v33, %v271_v30  ;;  %v259_v48 = vld [vmem:[%s3429_s3 + $0x58] sm:$0xff]  ;;  %v283_v50 = vand.u32 4294901760, %v254_v36  ;;  %v260_v26 = vld [vmem:[%s3429_s3 + $0x60] sm:$0xff]  ;;  %v261_v27 = vld [vmem:[%s3429_s3 + $0x68] sm:$0xff] }
  0x1e   :  { %v915_v22 = vmax.f32 %v913_v21, 1.0  ;;  %v2869_v46 = vsub.f32 %v251_v29, %v274_v33  ;;  %v2871_v47 = vsub.f32 %v252_v31, %v277_v34  ;;  %v2877_v49 = vsub.f32 %v253_v32, %v280_v35  ;;  %v262_v31 = vld [vmem:[%s3429_s3 + $0x70] sm:$0xff]  ;;  %v263_v32 = vld [vmem:[%s3429_s3 + $0x78] sm:$0xff] }
  0x1f   :  { %2340 = vmatpush3.bf16.msra.mxu1 %v2853_v39  ;;  %v286_v51 = vand.u32 4294901760, %v255_v37  ;;  %v289_v52 = vand.u32 4294901760, %v256_v38  ;;  %v292_v53 = vand.u32 4294901760, %v257_v43  ;;  %v295_v54 = vand.u32 4294901760, %v258_v44 }
  0x20   :  { %2341 = vmatprep.subr.bf16.mxu1 %v2713_v7  ;;  %v2880_v55 = vsub.f32 %v254_v36, %v283_v50  ;;  %v298_v58 = vand.u32 4294901760, %v259_v48  ;;  %v2891_v61 = vpack.c.bf16 %v280_v35, %v277_v34  ;;  %v44_v5 = vand.u32 127, %v43_v2 }
  0x21   :  { %102 = vperm.xlu1 %2658, %v66_v8   ;;  %99 = vperm.xlu0 %2657, %v65_v9   ;;  %v2882_v56 = vsub.f32 %v255_v37, %v286_v51  ;;  %v2884_v57 = vsub.f32 %v256_v38, %v289_v52  ;;  %v2886_v59 = vsub.f32 %v257_v43, %v292_v53  ;;  %v2716_v9 = vmov 1.0|1.0  }
  0x22   :  { %v2888_v60 = vsub.f32 %v258_v44, %v295_v54  ;;  %v2893_v62 = vsub.f32 %v259_v48, %v298_v58  ;;  %v2897_v63 = vpack.c.bf16 %v286_v51, %v283_v50  ;;  %v2901_v0 = vpack.c.bf16 %v292_v53, %v289_v52 }
  0x23   :  { %2343 = vmatpush3.bf16.msra.mxu1 %v2867_v45  ;;  %v2905_v1 = vpack.c.bf16 %v298_v58, %v295_v54  ;;  %v2717_v25 = vmov 1.0   ;;  %v301_v28 = vand.u32 4294901760, %v260_v26  ;;  %v304_v29 = vand.u32 4294901760, %v261_v27 }
  0x24   :  { %2344 = vmatprep.subr.bf16.mxu1 %v2713_v7  ;;  %v307_v33 = vand.u32 4294901760, %v262_v31  ;;  %v310_v34 = vand.u32 4294901760, %v263_v32  ;;  %v358_v35 = vand.u32 4294901760, %v2855_v40  ;;  %v365_v36 = vand.u32 4294901760, %v2857_v41 }
  0x25   :  { %108 = vperm.xlu1 %2658, %v68_v10   ;;  %105 = vperm.xlu0 %2657, %v67_v11   ;;  %v2926_v30 = vpack.c.bf16 %v304_v29, %v301_v28  ;;  %v2938_v37 = vsub.f32 %v260_v26, %v301_v28  ;;  %v2940_v38 = vsub.f32 %v261_v27, %v304_v29  ;;  %v3446_v54 = vand.u32 4294901760, %v2859_v42 }
  0x26   :  { %v2942_v43 = vpack.c.bf16 %v310_v34, %v307_v33  ;;  %v2944_v44 = vsub.f32 %v262_v31, %v307_v33  ;;  %v2946_v48 = vsub.f32 %v263_v32, %v310_v34  ;;  %v359_v50 = vsub.f32 %v2855_v40, %v358_v35 }
  0x27   :  { %2346 = vmatpush3.bf16.msra.mxu1 %v2891_v61  ;;  %v366_v51 = vsub.f32 %v2857_v41, %v365_v36  ;;  %v3445_v58 = vand.u32 4294901760, %v2869_v46  ;;  %v3438_v31 = vand.u32 4294901760, %v2888_v60  ;;  %v3437_v32 = vand.u32 4294901760, %v2893_v62 }
  0x28   :  { %2347 = vmatprep.subr.bf16.mxu1 %v2713_v7  ;;  %v360_v52 = vand.u32 4294901760, %v359_v50 }
  0x29   :  { %114 = vperm.xlu1 %2658, %v70_v12   ;;  %111 = vperm.xlu0 %2657, %v69_v13   ;;  %v367_v53 = vand.u32 4294901760, %v366_v51  ;;  %v429_v34 = vsub.f32 %v2888_v60, %v3438_v31  ;;  %v436_v50 = vsub.f32 %v2893_v62, %v3437_v32 }
  0x2b   :  { %2349 = vmatpush3.bf16.msra.mxu1 %v2897_v63  ;;  %v2958_v2 = vpack.c.bf16 %v367_v53, %v360_v52  ;;  %v430_v51 = vand.u32 4294901760, %v429_v34  ;;  %v437_v52 = vand.u32 4294901760, %v436_v50  ;;  %v3436_v53 = vand.u32 4294901760, %v2938_v37 }
  0x2c   :  { %2350 = vmatprep.subr.bf16.mxu1 %v2713_v7  ;;  %v2393_v34 = vpack.c.bf16 %v2877_v49, %v2871_v47  ;;  %v2396_v50 = vpack.c.bf16 %v2882_v56, %v2880_v55 }
  0x2d   :  { %120 = vperm.xlu1 %2658, %v72_v14   ;;  %117 = vperm.xlu0 %2657, %v71_v15  }
  0x2f   :  { %2352 = vmatpush3.bf16.msra.mxu1 %v2901_v0 }
  0x30   :  { %2353 = vmatprep.subr.bf16.mxu1 %v2713_v7 }
  0x31   :  { %126 = vperm.xlu1 %2658, %v74_v19   ;;  %123 = vperm.xlu0 %2657, %v73_v20  }
  0x33   :  { %2355 = vmatpush3.bf16.msra.mxu1 %v2905_v1 }
  0x34   :  { %2356 = vmatprep.subr.bf16.mxu1 %v2713_v7 }
  0x35   :  { %52 = vperm.xlu1 %2658, %v50_v16   ;;  %47 = vperm.xlu0 %2657, %v45_v17  }
  0x37   :  { %2358 = vmatpush3.bf16.msra.mxu1 %v2926_v30 }
  0x38   :  { %2359 = vmatprep.subr.bf16.mxu1 %v2713_v7 }
  0x39   :  { %918 = vperm.xlu0 %2657, %v915_v22  }
  0x3b   :  { %2361 = vmatpush3.bf16.msra.mxu1 %v2942_v43 }
  0x3c   :  { %2362 = vmatprep.subr.bf16.mxu1 %v2713_v7 }
  0x94   :  { %v88_v3 = vpop.permute.xlu1 %87  ;;  %v82_v4 = vpop.permute.xlu0 %81 }
  0x95   :  { %vm128_vm2 = vcmp.eq.s32.totalorder %v44_v5, %v82_v4  ;;  %vm130_vm4 = vcmp.eq.s32.totalorder %v44_v5, %v88_v3  ;;  %v373_v3 = vsub.f32 %v2859_v42, %v3446_v54  ;;  %v380_v4 = vsub.f32 %v2869_v46, %v3445_v58 }
  0x98   :  { %v91_v6 = vpop.permute.xlu1 %90  ;;  %v85_v8 = vpop.permute.xlu0 %84 }
  0x99   :  { %vm129_vm1 = vcmp.eq.s32.totalorder %v44_v5, %v85_v8  ;;  %vm131_vm5 = vcmp.eq.s32.totalorder %v44_v5, %v91_v6  ;;  %v381_v6 = vand.u32 4294901760, %v380_v4  ;;  %v3444_v8 = vand.u32 4294901760, %v2871_v47 }
  0x9a   :  { %vm2315_vm3 = vmpackc.low %vm129_vm1, %vm128_vm2  ;;  %v2378_v4 = vpack.c.bf16 %v437_v52, %v430_v51  ;;  %v2399_v51 = vpack.c.bf16 %v2886_v59, %v2884_v57  ;;  %v2402_v52 = vpack.c.bf16 %v2893_v62, %v2888_v60 }
  0x9b   :  { %2316 = vmatpush3.bf16.msk.msra.mxu0 %vm2315_vm3, %v2716_v9  ;;  %vm2318_vm6 = vmpackc.low %vm131_vm5, %vm130_vm4 }
  0x9c   :  { %v97_v10 = vpop.permute.xlu1 %96  ;;  %v94_v11 = vpop.permute.xlu0 %93  ;;  %2317 = vmatprep.subr.bf16.mxu0 %v2713_v7 }
  0x9d   :  { %vm133_vm7 = vcmp.eq.s32.totalorder %v44_v5, %v97_v10  ;;  %vm132_vm8 = vcmp.eq.s32.totalorder %v44_v5, %v94_v11  ;;  %v387_v11 = vsub.f32 %v2871_v47, %v3444_v8 }
  0x9e   :  { %vm2321_vm9 = vmpackc.low %vm133_vm7, %vm132_vm8 }
  0x9f   :  { %2319 = vmatpush3.bf16.msk.msra.mxu0 %vm2318_vm6, %v2716_v9 }
  0xa0   :  { %v103_v12 = vpop.permute.xlu1 %102  ;;  %v100_v13 = vpop.permute.xlu0 %99  ;;  %2320 = vmatprep.subr.bf16.mxu0 %v2713_v7 }
  0xa1   :  { %vm135_vm10 = vcmp.eq.s32.totalorder %v44_v5, %v103_v12  ;;  %vm134_vm11 = vcmp.eq.s32.totalorder %v44_v5, %v100_v13  ;;  %v388_v13 = vand.u32 4294901760, %v387_v11 }
  0xa2   :  { %vm2324_vm12 = vmpackc.low %vm135_vm10, %vm134_vm11 }
  0xa3   :  { %2322 = vmatpush3.bf16.msk.msra.mxu0 %vm2321_vm9, %v2716_v9 }
  0xa4   :  { %v109_v14 = vpop.permute.xlu1 %108  ;;  %v106_v15 = vpop.permute.xlu0 %105  ;;  %2323 = vmatprep.subr.bf16.mxu0 %v2713_v7 }
  0xa5   :  { %vm137_vm13 = vcmp.eq.s32.totalorder %v44_v5, %v109_v14  ;;  %vm136_vm14 = vcmp.eq.s32.totalorder %v44_v5, %v106_v15  ;;  %v3442_v15 = vand.u32 4294901760, %v2880_v55 }
  0xa6   :  { %vm2327_vm15 = vmpackc.low %vm137_vm13, %vm136_vm14 }
  0xa7   :  { %2325 = vmatpush3.bf16.msk.msra.mxu0 %vm2324_vm12, %v2716_v9 }
  0xa8   :  { %v115_v16 = vpop.permute.xlu1 %114  ;;  %v112_v17 = vpop.permute.xlu0 %111  ;;  %2326 = vmatprep.subr.bf16.mxu0 %v2713_v7 }
  0xa9   :  { %vm139_vm1 = vcmp.eq.s32.totalorder %v44_v5, %v115_v16  ;;  %vm138_vm2 = vcmp.eq.s32.totalorder %v44_v5, %v112_v17  ;;  %v3441_v16 = vand.u32 4294901760, %v2882_v56 }
  0xaa   :  { %vm2330_vm3 = vmpackc.low %vm139_vm1, %vm138_vm2 }
  0xab   :  { %2328 = vmatpush3.bf16.msk.msra.mxu0 %vm2327_vm15, %v2716_v9 }
  0xac   :  { %v121_v18 = vpop.permute.xlu1 %120  ;;  %v118_v19 = vpop.permute.xlu0 %117  ;;  %2329 = vmatprep.subr.bf16.mxu0 %v2713_v7 }
  0xad   :  { %vm141_vm4 = vcmp.eq.s32.totalorder %v44_v5, %v121_v18  ;;  %vm140_vm5 = vcmp.eq.s32.totalorder %v44_v5, %v118_v19  ;;  %v401_v18 = vsub.f32 %v2880_v55, %v3442_v15  ;;  %v408_v19 = vsub.f32 %v2882_v56, %v3441_v16 }
  0xae   :  { %vm2333_vm6 = vmpackc.low %vm141_vm4, %vm140_vm5 }
  0xaf   :  { %2331 = vmatpush3.bf16.msk.msra.mxu0 %vm2330_vm3, %v2716_v9 }
  0xb0   :  { %v127_v20 = vpop.permute.xlu1 %126  ;;  %v124_v21 = vpop.permute.xlu0 %123  ;;  %2332 = vmatprep.subr.bf16.mxu0 %v2713_v7 }
  0xb1   :  { %vm143_vm7 = vcmp.eq.s32.totalorder %v44_v5, %v127_v20  ;;  %vm142_vm8 = vcmp.eq.s32.totalorder %v44_v5, %v124_v21  ;;  %v402_v20 = vand.u32 4294901760, %v401_v18  ;;  %v409_v21 = vand.u32 4294901760, %v408_v19 }
  0xb2   :  { %vm2336_vm9 = vmpackc.low %vm143_vm7, %vm142_vm8 }
  0xb3   :  { %2334 = vmatpush3.bf16.msk.msra.mxu0 %vm2333_vm6, %v2716_v9 }
  0xb4   :  { %v53_v22 = vpop.permute.xlu1 %52  ;;  %v48_v24 = vpop.permute.xlu0 %47  ;;  %2335 = vmatprep.subr.bf16.mxu0 %v2713_v7 }
  0xb5   :  { %vm54_vm10 = vcmp.lt.s32.totalorder %v44_v5, %v53_v22  ;;  %vm49_vm11 = vcmp.ge.s32.totalorder %v44_v5, %v48_v24  ;;  %v374_v5 = vand.u32 4294901760, %v373_v3  ;;  %v3440_v22 = vand.u32 4294901760, %v2884_v57 }
  0xb6   :  { %vm55_vm12 = vmand %vm49_vm11, %vm54_vm10  ;;  %v3439_v24 = vand.u32 4294901760, %v2886_v59  ;;  %v3435_v3 = vand.u32 4294901760, %v2940_v38 }
  0xb7   :  { %2337 = vmatpush3.bf16.msk.msra.mxu0 %vm2336_vm9, %v2716_v9  ;;  %v3443_v9 = vand.u32 4294901760, %v2877_v49  ;;  %v2366_v10 = vpack.c.bf16 %v381_v6, %v374_v5  ;;  %v415_v26 = vsub.f32 %v2884_v57, %v3440_v22  ;;  %v443_v5 = vsub.f32 %v2938_v37, %v3436_v53  ;;  %v931_v53 = vld [vmem:[#allocation4 + $0x40] sm:$0xff]  ;;  %v932_v22 = vld [vmem:[#allocation4 + $0x48] sm:$0xff] }
  0xb8   :  { %2482 = vmatprep.subr.bf16.mxu0 %v2713_v7  ;;  %v422_v27 = vsub.f32 %v2886_v59, %v3439_v24  ;;  %v450_v6 = vsub.f32 %v2940_v38, %v3435_v3  ;;  %v930_v3 = vld [vmem:[#allocation4 + $0x38] sm:$0xff] }
  0xb9   :  { %v394_v12 = vsub.f32 %v2877_v49, %v3443_v9  ;;  %v416_v28 = vand.u32 4294901760, %v415_v26  ;;  %v444_v11 = vand.u32 4294901760, %v443_v5  ;;  %v2405_v5 = vpack.c.bf16 %v2940_v38, %v2938_v37 }
  0xba   :  { %1892 = vmatmul.mubr.msk.f32.vlgmr.msra.gmra.mrb[0].mxu0 %vm55_vm12, %v2717_v25  ;;  %v2372_v25 = vpack.c.bf16 %v409_v21, %v402_v20  ;;  %v423_v29 = vand.u32 4294901760, %v422_v27  ;;  %v968_v54 = vand.u32 4294901760, %v930_v3 }
  0xbb   :  { %2136 = vmatprep.mubr.msk.f32.mxu0 %vm2714_vm0, %v2715_v23  ;;  %v395_v14 = vand.u32 4294901760, %v394_v12  ;;  %v451_v12 = vand.u32 4294901760, %v450_v6  ;;  %v2408_v6 = vpack.c.bf16 %v2946_v48, %v2944_v44 }
  0xbc   :  { %v2375_v33 = vpack.c.bf16 %v423_v29, %v416_v28  ;;  %v2387_v28 = vpack.c.bf16 %v2857_v41, %v2855_v40  ;;  %v2390_v29 = vpack.c.bf16 %v2869_v46, %v2859_v42  ;;  %v3453_v40 = vand.u32 4294901760, %v2871_v47 }
  0xbd   :  { %v2369_v17 = vpack.c.bf16 %v395_v14, %v388_v13  ;;  %v3434_v13 = vand.u32 4294901760, %v2944_v44  ;;  %v3433_v14 = vand.u32 4294901760, %v2946_v48  ;;  %v2381_v18 = vpack.c.bf16 %v451_v12, %v444_v11 }
  0xbe   :  { %v3454_v41 = vand.u32 4294901760, %v2877_v49  ;;  %v3459_v47 = vand.u32 4294901760, %v2888_v60  ;;  %v3460_v49 = vand.u32 4294901760, %v2893_v62 }
  0xbf   :  { %v457_v19 = vsub.f32 %v2944_v44, %v3434_v13  ;;  %v464_v20 = vsub.f32 %v2946_v48, %v3433_v14  ;;  %v929_v13 = vld [vmem:[#allocation4 + $0x30] sm:$0xff] }
  0xc0   :  { %v965_v58 = vand.u32 4294901760, %v929_v13 }
  0xc1   :  { %v458_v21 = vand.u32 4294901760, %v457_v19  ;;  %v465_v26 = vand.u32 4294901760, %v464_v20 }
  0xc3   :  { %v2384_v27 = vpack.c.bf16 %v465_v26, %v458_v21 }
 0x18d   :  { %v243_v11 = vpop.f32.mrb[0].mxu0 }
 0x18e   :  { %v3030_v12 = vand.u32 4294901760, %v243_v11  ;;  %v1893_v19 = vpop.f32.mrb[1].mxu0 }
 0x190   :  { %v3033_v20 = vsub.f32 %v243_v11, %v3030_v12  ;;  %v927_v11 = vld [vmem:[#allocation4 + $0x20] sm:$0xff] }
 0x191   :  { %v959_v19 = vand.u32 4294901760, %v927_v11 }
 0x192   :  { %v347_v21 = vand.u32 4294901760, %v3033_v20 }
 0x193   :  { %v3066_v9 = vsub.f32 %v927_v11, %v959_v19 }
 0x194   :  { %v348_v26 = vsub.f32 %v3033_v20, %v347_v21 }
 0x196   :  { %v349_v14 = vand.u32 4294901760, %v348_v26 }
 0x198   :  { %1927 = vmatmul.mubr.f32.vlgmr.msra.gmra.mrb[0].mxu1 %v349_v14 }
 0x199   :  { %2364 = vmatpush3.bf16.msra.mxu1 %v2958_v2  ;;  %1961 = vmatprep.mubr.msk.f32.mxu1 %vm2714_vm0, %v2715_v23  ;;  %v923_v2 = vld [vmem:[#allocation4] sm:$0xff] }
 0x19a   :  { %2365 = vmatprep.subr.bf16.mxu1 %v2713_v7 }
 0x19d   :  { %2367 = vmatpush3.bf16.msra.mxu1 %v2366_v10  ;;  %v924_v10 = vld [vmem:[#allocation4 + $0x8] sm:$0xff] }
 0x19e   :  { %2368 = vmatprep.subr.bf16.mxu1 %v2713_v7 }
 0x1a1   :  { %2370 = vmatpush3.bf16.msra.mxu1 %v2369_v17  ;;  %v925_v17 = vld [vmem:[#allocation4 + $0x10] sm:$0xff] }
 0x1a2   :  { %2371 = vmatprep.subr.bf16.mxu1 %v2713_v7  ;;  %v953_v14 = vand.u32 4294901760, %v925_v17 }
 0x1a4   :  { %v3060_v24 = vsub.f32 %v925_v17, %v953_v14  ;;  %v3073_v17 = vsub.f32 %v929_v13, %v965_v58 }
 0x1a5   :  { %2373 = vmatpush3.bf16.msra.mxu1 %v2372_v25  ;;  %v947_v25 = vand.u32 4294901760, %v923_v2 }
 0x1a6   :  { %2374 = vmatprep.subr.bf16.mxu1 %v2713_v7 }
 0x1a9   :  { %2376 = vmatpush3.bf16.msra.mxu1 %v2375_v33  ;;  %v950_v33 = vand.u32 4294901760, %v924_v10 }
 0x1aa   :  { %2377 = vmatprep.subr.bf16.mxu1 %v2713_v7 }
 0x1ab   :  { %v3054_v32 = vpack.c.bf16 %v950_v33, %v947_v25  ;;  %v3058_v31 = vsub.f32 %v924_v10, %v950_v33  ;;  %v974_v10 = vand.u32 4294901760, %v932_v22 }
 0x1ad   :  { %2379 = vmatpush3.bf16.msra.mxu1 %v2378_v4  ;;  %v926_v4 = vld [vmem:[#allocation4 + $0x18] sm:$0xff]  ;;  %2484 = vmatpush3.bf16.msra.mxu0 %v3054_v32 }
 0x1ae   :  { %2380 = vmatprep.subr.bf16.mxu1 %v2713_v7  ;;  %2485 = vmatprep.subr.bf16.mxu0 %v2713_v7 }
 0x1b1   :  { %2382 = vmatpush3.bf16.msra.mxu1 %v2381_v18  ;;  %v928_v18 = vld [vmem:[#allocation4 + $0x28] sm:$0xff] }
 0x1b2   :  { %2383 = vmatprep.subr.bf16.mxu1 %v2713_v7  ;;  %v962_v26 = vand.u32 4294901760, %v928_v18 }
 0x1b4   :  { %v3069_v8 = vsub.f32 %v928_v18, %v962_v26 }
 0x1b5   :  { %2385 = vmatpush3.bf16.msra.mxu1 %v2384_v27  ;;  %v956_v27 = vand.u32 4294901760, %v926_v4 }
 0x1b6   :  { %2386 = vmatprep.subr.bf16.mxu1 %v2713_v7 }
 0x1b7   :  { %v3062_v16 = vpack.c.bf16 %v956_v27, %v953_v14  ;;  %v3064_v15 = vsub.f32 %v926_v4, %v956_v27  ;;  %v3079_v4 = vsub.f32 %v932_v22, %v974_v10  ;;  %v3093_v22 = vpack.c.bf16 %v968_v54, %v965_v58 }
 0x1b8   :  { %1962 = vmatmul.mubr.f32.vlgmr.msra.gmra.mrb[0].mxu1 %v3030_v12  ;;  %v3451_v58 = vand.u32 4294901760, %v2859_v42  ;;  %v3456_v42 = vand.u32 4294901760, %v2882_v56  ;;  %v3462_v56 = vand.u32 4294901760, %v2940_v38  ;;  %v937_v38 = vld [vmem:[#allocation4 + $0x70] sm:$0xff] }
 0x1b9   :  { %2388 = vmatpush3.bf16.msra.mxu1 %v2387_v28  ;;  %1996 = vmatprep.mubr.msk.f32.mxu1 %vm2714_vm0, %v2715_v23  ;;  %v3056_v28 = vsub.f32 %v923_v2, %v947_v25  ;;  %v971_v2 = vand.u32 4294901760, %v931_v53  ;;  %v3075_v25 = vsub.f32 %v930_v3, %v968_v54  ;;  %v2435_v54 = vpack.c.bf16 %v365_v36, %v358_v35 }
 0x1ba   :  { %2389 = vmatprep.subr.bf16.mxu1 %v2713_v7  ;;  %2487 = vmatpush3.bf16.msra.mxu0 %v3062_v16  ;;  %v3452_v3 = vand.u32 4294901760, %v2869_v46  ;;  %v2441_v35 = vpack.c.bf16 %v3454_v41, %v3453_v40  ;;  %v3455_v36 = vand.u32 4294901760, %v2880_v55  ;;  %v3461_v55 = vand.u32 4294901760, %v2938_v37 }
 0x1bb   :  { %v3077_v33 = vsub.f32 %v931_v53, %v971_v2  ;;  %2488 = vmatprep.subr.bf16.mxu0 %v2713_v7  ;;  %v3101_v53 = vpack.c.bf16 %v974_v10, %v971_v2 }
 0x1bc   :  { %v2438_v13 = vpack.c.bf16 %v3452_v3, %v3451_v58  ;;  %v2444_v46 = vpack.c.bf16 %v3456_v42, %v3455_v36  ;;  %v1054_v3 = vand.u32 4294901760, %v3060_v24  ;;  %v1068_v36 = vand.u32 4294901760, %v3066_v9 }
 0x1bd   :  { %2391 = vmatpush3.bf16.msra.mxu1 %v2390_v29  ;;  %v3085_v29 = vpack.c.bf16 %v962_v26, %v959_v19  ;;  %v1075_v42 = vand.u32 4294901760, %v3069_v8 }
 0x1be   :  { %2392 = vmatprep.subr.bf16.mxu1 %v2713_v7  ;;  %v1055_v41 = vsub.f32 %v3060_v24, %v1054_v3 }
 0x1bf   :  { %2490 = vmatpush3.bf16.msra.mxu0 %v3085_v29 }
 0x1c0   :  { %2491 = vmatprep.subr.bf16.mxu0 %v2713_v7 }
 0x1c1   :  { %2394 = vmatpush3.bf16.msra.mxu1 %v2393_v34  ;;  %v3457_v34 = vand.u32 4294901760, %v2884_v57  ;;  %v3463_v57 = vand.u32 4294901760, %v2944_v44  ;;  %v989_v44 = vand.u32 4294901760, %v937_v38 }
 0x1c2   :  { %2395 = vmatprep.subr.bf16.mxu1 %v2713_v7 }
 0x1c3   :  { %2493 = vmatpush3.bf16.msra.mxu0 %v3093_v22  ;;  %v3228_v2 = vsub.f32 %v937_v38, %v989_v44 }
 0x1c4   :  { %2494 = vmatprep.subr.bf16.mxu0 %v2713_v7 }
 0x1c5   :  { %2397 = vmatpush3.bf16.msra.mxu1 %v2396_v50  ;;  %v3458_v50 = vand.u32 4294901760, %v2886_v59  ;;  %v3464_v59 = vand.u32 4294901760, %v2946_v48 }
 0x1c6   :  { %2398 = vmatprep.subr.bf16.mxu1 %v2713_v7 }
 0x1c7   :  { %2496 = vmatpush3.bf16.msra.mxu0 %v3101_v53 }
 0x1c8   :  { %2497 = vmatprep.subr.bf16.mxu0 %v2713_v7 }
 0x1c9   :  { %2400 = vmatpush3.bf16.msra.mxu1 %v2399_v51  ;;  %v2447_v51 = vpack.c.bf16 %v3458_v50, %v3457_v34  ;;  %v1069_v50 = vsub.f32 %v3066_v9, %v1068_v36 }
 0x1ca   :  { %2401 = vmatprep.subr.bf16.mxu1 %v2713_v7 }
 0x1cd   :  { %2403 = vmatpush3.bf16.msra.mxu1 %v2402_v52  ;;  %v2450_v52 = vpack.c.bf16 %v3460_v49, %v3459_v47  ;;  %v1070_v49 = vand.u32 4294901760, %v1069_v50 }
 0x1ce   :  { %2404 = vmatprep.subr.bf16.mxu1 %v2713_v7 }
 0x1d1   :  { %2406 = vmatpush3.bf16.msra.mxu1 %v2405_v5  ;;  %v2453_v5 = vpack.c.bf16 %v3462_v56, %v3461_v55  ;;  %v1082_v55 = vand.u32 4294901760, %v3073_v17  ;;  %v1089_v56 = vand.u32 4294901760, %v3075_v25 }
 0x1d2   :  { %2407 = vmatprep.subr.bf16.mxu1 %v2713_v7 }
 0x1d5   :  { %2409 = vmatpush3.bf16.msra.mxu1 %v2408_v6  ;;  %v2456_v6 = vpack.c.bf16 %v3464_v59, %v3463_v57  ;;  %v1083_v57 = vsub.f32 %v3073_v17, %v1082_v55  ;;  %v1090_v59 = vsub.f32 %v3075_v25, %v1089_v56 }
 0x1d6   :  { %2410 = vmatprep.subr.bf16.mxu1 %v2713_v7 }
 0x1d8   :  { %1997 = vmatmul.mubr.f32.vlgmr.msra.gmra.mrb[0].mxu1 %v3033_v20  ;;  %v1047_v20 = vand.u32 4294901760, %v3058_v31 }
 0x1d9   :  { %2412 = vmatpush3.bf16.msra.mxu1 %v2853_v39  ;;  %2031 = vmatprep.mubr.msk.f32.mxu1 %vm2714_vm0, %v2715_v23 }
 0x1da   :  { %2413 = vmatprep.subr.bf16.mxu1 %v2713_v7  ;;  %v1048_v11 = vsub.f32 %v3058_v31, %v1047_v20 }
 0x1dc   :  { %v1049_v58 = vand.u32 4294901760, %v1048_v11 }
 0x1dd   :  { %2415 = vmatpush3.bf16.msra.mxu1 %v2867_v45 }
 0x1de   :  { %2416 = vmatprep.subr.bf16.mxu1 %v2713_v7 }
 0x1e1   :  { %2418 = vmatpush3.bf16.msra.mxu1 %v2891_v61 }
 0x1e2   :  { %2419 = vmatprep.subr.bf16.mxu1 %v2713_v7 }
 0x1e5   :  { %2421 = vmatpush3.bf16.msra.mxu1 %v2897_v63 }
 0x1e6   :  { %2422 = vmatprep.subr.bf16.mxu1 %v2713_v7 }
 0x1e9   :  { %2424 = vmatpush3.bf16.msra.mxu1 %v2901_v0 }
 0x1ea   :  { %2425 = vmatprep.subr.bf16.mxu1 %v2713_v7 }
 0x1ed   :  { %2427 = vmatpush3.bf16.msra.mxu1 %v2905_v1 }
 0x1ee   :  { %2428 = vmatprep.subr.bf16.mxu1 %v2713_v7 }
 0x1f1   :  { %2430 = vmatpush3.bf16.msra.mxu1 %v2926_v30 }
 0x1f2   :  { %2431 = vmatprep.subr.bf16.mxu1 %v2713_v7 }
 0x1f5   :  { %2433 = vmatpush3.bf16.msra.mxu1 %v2942_v43 }
 0x1f6   :  { %2434 = vmatprep.subr.bf16.mxu1 %v2713_v7 }
 0x1f8   :  { %2032 = vmatmul.mubr.f32.vlgmr.msra.gmra.mrb[0].mxu1 %v347_v21 }
 0x1f9   :  { %2436 = vmatpush3.bf16.msra.mxu1 %v2435_v54  ;;  %2066 = vmatprep.mubr.msk.f32.mxu1 %vm2714_vm0, %v2715_v23 }
 0x1fa   :  { %2437 = vmatprep.subr.bf16.mxu1 %v2713_v7 }
 0x1fd   :  { %2439 = vmatpush3.bf16.msra.mxu1 %v2438_v13  ;;  %v1061_v13 = vand.u32 4294901760, %v3064_v15 }
 0x1fe   :  { %2440 = vmatprep.subr.bf16.mxu1 %v2713_v7 }
 0x201   :  { %2442 = vmatpush3.bf16.msra.mxu1 %v2441_v35  ;;  %v1062_v35 = vsub.f32 %v3064_v15, %v1061_v13 }
 0x202   :  { %2443 = vmatprep.subr.bf16.mxu1 %v2713_v7 }
 0x203   :  { %v1063_v34 = vand.u32 4294901760, %v1062_v35 }
 0x205   :  { %2445 = vmatpush3.bf16.msra.mxu1 %v2444_v46  ;;  %v1056_v46 = vand.u32 4294901760, %v1055_v41 }
 0x206   :  { %2446 = vmatprep.subr.bf16.mxu1 %v2713_v7 }
 0x207   :  { %v2510_v47 = vpack.c.bf16 %v1063_v34, %v1056_v46 }
 0x209   :  { %2448 = vmatpush3.bf16.msra.mxu1 %v2447_v51  ;;  %v1076_v51 = vsub.f32 %v3069_v8, %v1075_v42 }
 0x20a   :  { %2449 = vmatprep.subr.bf16.mxu1 %v2713_v7 }
 0x20d   :  { %2451 = vmatpush3.bf16.msra.mxu1 %v2450_v52  ;;  %v1077_v52 = vand.u32 4294901760, %v1076_v51 }
 0x20e   :  { %2452 = vmatprep.subr.bf16.mxu1 %v2713_v7 }
 0x211   :  { %2454 = vmatpush3.bf16.msra.mxu1 %v2453_v5  ;;  %v2513_v5 = vpack.c.bf16 %v1077_v52, %v1070_v49  ;;  %v3448_v49 = vand.u32 4294901760, %v3228_v2 }
 0x212   :  { %2455 = vmatprep.subr.bf16.mxu1 %v2713_v7 }
 0x215   :  { %2457 = vmatpush3.bf16.msra.mxu1 %v2456_v6  ;;  %v1084_v6 = vand.u32 4294901760, %v1083_v57 }
 0x216   :  { %2458 = vmatprep.subr.bf16.mxu1 %v2713_v7 }
 0x218   :  { %2067 = vmatmul.mubr.f32.vlgmr.msra.gmra.mrb[0].mxu1 %v3030_v12 }
 0x219   :  { %2460 = vmatpush3.bf16.msra.mxu1 %v2853_v39  ;;  %2101 = vmatprep.mubr.msk.f32.mxu1 %vm2714_vm0, %v2715_v23  ;;  %v933_v39 = vld [vmem:[#allocation4 + $0x50] sm:$0xff] }
 0x21a   :  { %2461 = vmatprep.subr.bf16.mxu1 %v2713_v7  ;;  %v977_v60 = vand.u32 4294901760, %v933_v39 }
 0x21c   :  { %v3219_v18 = vsub.f32 %v933_v39, %v977_v60  ;;  %v1091_v39 = vand.u32 4294901760, %v1090_v59  ;;  %v1139_v59 = vsub.f32 %v3228_v2, %v3448_v49 }
 0x21d   :  { %2463 = vmatpush3.bf16.msra.mxu1 %v2867_v45  ;;  %v934_v45 = vld [vmem:[#allocation4 + $0x58] sm:$0xff] }
 0x21e   :  { %2464 = vmatprep.subr.bf16.mxu1 %v2713_v7  ;;  %v1110_v38 = vand.u32 4294901760, %v3219_v18 }
 0x221   :  { %2466 = vmatpush3.bf16.msra.mxu1 %v2891_v61  ;;  %v980_v61 = vand.u32 4294901760, %v934_v45 }
 0x222   :  { %2467 = vmatprep.subr.bf16.mxu1 %v2713_v7 }
 0x223   :  { %v3201_v62 = vpack.c.bf16 %v980_v61, %v977_v60  ;;  %v3221_v27 = vsub.f32 %v934_v45, %v980_v61  ;;  %v1096_v45 = vand.u32 4294901760, %v3077_v33  ;;  %v1103_v60 = vand.u32 4294901760, %v3079_v4 }
 0x224   :  { %v2516_v61 = vpack.c.bf16 %v1091_v39, %v1084_v6  ;;  %v1140_v39 = vand.u32 4294901760, %v1139_v59 }
 0x225   :  { %2469 = vmatpush3.bf16.msra.mxu1 %v2897_v63  ;;  %v935_v63 = vld [vmem:[#allocation4 + $0x60] sm:$0xff]  ;;  %2499 = vmatpush3.bf16.msra.mxu0 %v3201_v62 }
 0x226   :  { %2470 = vmatprep.subr.bf16.mxu1 %v2713_v7  ;;  %2500 = vmatprep.subr.bf16.mxu0 %v2713_v7 }
 0x229   :  { %2472 = vmatpush3.bf16.msra.mxu1 %v2901_v0  ;;  %v936_v0 = vld [vmem:[#allocation4 + $0x68] sm:$0xff] }
 0x22a   :  { %2473 = vmatprep.subr.bf16.mxu1 %v2713_v7  ;;  %v986_v37 = vand.u32 4294901760, %v936_v0 }
 0x22c   :  { %v3225_v26 = vsub.f32 %v936_v0, %v986_v37  ;;  %v1104_v0 = vsub.f32 %v3079_v4, %v1103_v60 }
 0x22d   :  { %2475 = vmatpush3.bf16.msra.mxu1 %v2905_v1  ;;  %v983_v1 = vand.u32 4294901760, %v935_v63 }
 0x22e   :  { %2476 = vmatprep.subr.bf16.mxu1 %v2713_v7  ;;  %v3449_v41 = vand.u32 4294901760, %v3225_v26 }
 0x22f   :  { %v3223_v19 = vsub.f32 %v935_v63, %v983_v1  ;;  %v1097_v63 = vsub.f32 %v3077_v33, %v1096_v45 }
 0x230   :  { %v1132_v34 = vsub.f32 %v3225_v26, %v3449_v41 }
 0x231   :  { %2478 = vmatpush3.bf16.msra.mxu1 %v2926_v30  ;;  %v3205_v30 = vpack.c.bf16 %v986_v37, %v983_v1  ;;  %v1098_v1 = vand.u32 4294901760, %v1097_v63  ;;  %v1105_v37 = vand.u32 4294901760, %v1104_v0 }
 0x232   :  { %2479 = vmatprep.subr.bf16.mxu1 %v2713_v7  ;;  %v1133_v51 = vand.u32 4294901760, %v1132_v34 }
 0x233   :  { %2502 = vmatpush3.bf16.msra.mxu0 %v3205_v30 }
 0x234   :  { %2503 = vmatprep.subr.bf16.mxu0 %v2713_v7 }
 0x235   :  { %2481 = vmatpush3.bf16.msra.mxu1 %v2942_v43  ;;  %v938_v43 = vld [vmem:[#allocation4 + $0x78] sm:$0xff] }
 0x236   :  { %v992_v48 = vand.u32 4294901760, %v938_v43 }
 0x238   :  { %2102 = vmatmul.mubr.f32.vlgmr.msra.gmra.mrb[0].mxu1 %v3030_v12  ;;  %v1040_v12 = vand.u32 4294901760, %v3056_v28  ;;  %v3211_v21 = vpack.c.bf16 %v992_v48, %v989_v44  ;;  %v3230_v10 = vsub.f32 %v938_v43, %v992_v48  ;;  %v1117_v43 = vand.u32 4294901760, %v3221_v27 }
 0x239   :  { %v2519_v44 = vpack.c.bf16 %v1105_v37, %v1098_v1  ;;  %v1111_v48 = vsub.f32 %v3219_v18, %v1110_v38  ;;  %v2531_v1 = vpack.c.bf16 %v3058_v31, %v3056_v28  ;;  %v2534_v37 = vpack.c.bf16 %v3064_v15, %v3060_v24 }
 0x23a   :  { %v1041_v14 = vsub.f32 %v3056_v28, %v1040_v12  ;;  %2505 = vmatpush3.bf16.msra.mxu0 %v3211_v21  ;;  %v3447_v52 = vand.u32 4294901760, %v3230_v10  ;;  %v2552_v34 = vpack.c.bf16 %v3230_v10, %v3228_v2  ;;  %v2585_v31 = vpack.c.bf16 %v1075_v42, %v1068_v36 }
 0x23b   :  { %2506 = vmatprep.subr.bf16.mxu0 %v2713_v7  ;;  %v1112_v11 = vand.u32 4294901760, %v1111_v48  ;;  %v2537_v48 = vpack.c.bf16 %v3069_v8, %v3066_v9  ;;  %v2588_v15 = vpack.c.bf16 %v1089_v56, %v1082_v55  ;;  %v2591_v24 = vpack.c.bf16 %v1103_v60, %v1096_v45 }
 0x23c   :  { %v1042_v54 = vand.u32 4294901760, %v1041_v14  ;;  %v1118_v14 = vsub.f32 %v3221_v27, %v1117_v43  ;;  %v1146_v6 = vsub.f32 %v3230_v10, %v3447_v52  ;;  %v2594_v8 = vpack.c.bf16 %v1117_v43, %v1110_v38 }
 0x23d   :  { %v3465_v9 = vand.u32 4294901760, %v3223_v19  ;;  %v3466_v28 = vand.u32 4294901760, %v3225_v26 }
 0x23e   :  { %v3235_v40 = vpack.c.bf16 %v1049_v58, %v1042_v54  ;;  %v1119_v54 = vand.u32 4294901760, %v1118_v14  ;;  %v3450_v58 = vand.u32 4294901760, %v3223_v19  ;;  %v1147_v63 = vand.u32 4294901760, %v1146_v6 }
 0x23f   :  { %v2540_v14 = vpack.c.bf16 %v3075_v25, %v3073_v17  ;;  %v2597_v17 = vpack.c.bf16 %v3466_v28, %v3465_v9  ;;  %v3467_v25 = vand.u32 4294901760, %v3228_v2 }
 0x240   :  { %v2522_v35 = vpack.c.bf16 %v1119_v54, %v1112_v11  ;;  %v1125_v46 = vsub.f32 %v3223_v19, %v3450_v58  ;;  %v2528_v0 = vpack.c.bf16 %v1147_v63, %v1140_v39  ;;  %v2543_v11 = vpack.c.bf16 %v3079_v4, %v3077_v33 }
 0x241   :  { %v2546_v54 = vpack.c.bf16 %v3221_v27, %v3219_v18  ;;  %v3468_v33 = vand.u32 4294901760, %v3230_v10 }
 0x242   :  { %v1126_v50 = vand.u32 4294901760, %v1125_v46  ;;  %v2549_v46 = vpack.c.bf16 %v3225_v26, %v3223_v19 }
 0x243   :  { %v2600_v4 = vpack.c.bf16 %v3468_v33, %v3467_v25 }
 0x244   :  { %v2525_v57 = vpack.c.bf16 %v1133_v51, %v1126_v50  ;;  %v919_v50 = vpop.permute.xlu0 %918 }
 0x245   :  { %2659 = vrcp.f32 %v919_v50 }
 0x24f   :  { %v2660_v51 = vpop.eup %2659 }
 0x30b   :  { %v901_v59 = vpop.f32.mrb[0].mxu1 }
 0x30c   :  { %v922_v6 = vmul.f32 %v2660_v51, %v901_v59  ;;  %v2103_v39 = vpop.f32.mrb[1].mxu1 }
 0x30e   :  { %v3307_v63 = vand.u32 4294901760, %v922_v6 }
 0x310   :  { %v1028_v52 = vsub.f32 %v922_v6, %v3307_v63 }
 0x312   :  { %v1029_v49 = vand.u32 4294901760, %v1028_v52 }
 0x314   :  { %v1030_v41 = vsub.f32 %v1028_v52, %v1029_v49 }
 0x316   :  { %v1031_v58 = vand.u32 4294901760, %v1030_v41 }
 0x318   :  { %2137 = vmatmul.mubr.f32.vlgmr.msra.gmra.mrb[2].mxu0 %v1031_v58 }
 0x319   :  { %2508 = vmatpush3.bf16.msra.mxu0 %v3235_v40  ;;  %2171 = vmatprep.mubr.msk.f32.mxu0 %vm2714_vm0, %v2715_v23  ;;  %v2579_v40 = vpack.c.bf16 %v1047_v20, %v1040_v12 }
 0x31a   :  { %2509 = vmatprep.subr.bf16.mxu0 %v2713_v7 }
 0x31d   :  { %2511 = vmatpush3.bf16.msra.mxu0 %v2510_v47  ;;  %v2582_v47 = vpack.c.bf16 %v1061_v13, %v1054_v3 }
 0x31e   :  { %2512 = vmatprep.subr.bf16.mxu0 %v2713_v7 }
 0x321   :  { %2514 = vmatpush3.bf16.msra.mxu0 %v2513_v5 }
 0x322   :  { %2515 = vmatprep.subr.bf16.mxu0 %v2713_v7 }
 0x325   :  { %2517 = vmatpush3.bf16.msra.mxu0 %v2516_v61 }
 0x326   :  { %2518 = vmatprep.subr.bf16.mxu0 %v2713_v7 }
 0x329   :  { %2520 = vmatpush3.bf16.msra.mxu0 %v2519_v44 }
 0x32a   :  { %2521 = vmatprep.subr.bf16.mxu0 %v2713_v7 }
 0x32d   :  { %2523 = vmatpush3.bf16.msra.mxu0 %v2522_v35 }
 0x32e   :  { %2524 = vmatprep.subr.bf16.mxu0 %v2713_v7 }
 0x331   :  { %2526 = vmatpush3.bf16.msra.mxu0 %v2525_v57 }
 0x332   :  { %2527 = vmatprep.subr.bf16.mxu0 %v2713_v7 }
 0x335   :  { %2529 = vmatpush3.bf16.msra.mxu0 %v2528_v0 }
 0x336   :  { %2530 = vmatprep.subr.bf16.mxu0 %v2713_v7 }
 0x338   :  { %2172 = vmatmul.mubr.f32.vlgmr.msra.gmra.mrb[2].mxu0 %v3307_v63 }
 0x339   :  { %2532 = vmatpush3.bf16.msra.mxu0 %v2531_v1  ;;  %2206 = vmatprep.mubr.msk.f32.mxu0 %vm2714_vm0, %v2715_v23 }
 0x33a   :  { %2533 = vmatprep.subr.bf16.mxu0 %v2713_v7 }
 0x33d   :  { %2535 = vmatpush3.bf16.msra.mxu0 %v2534_v37 }
 0x33e   :  { %2536 = vmatprep.subr.bf16.mxu0 %v2713_v7 }
 0x341   :  { %2538 = vmatpush3.bf16.msra.mxu0 %v2537_v48 }
 0x342   :  { %2539 = vmatprep.subr.bf16.mxu0 %v2713_v7 }
 0x345   :  { %2541 = vmatpush3.bf16.msra.mxu0 %v2540_v14 }
 0x346   :  { %2542 = vmatprep.subr.bf16.mxu0 %v2713_v7 }
 0x349   :  { %2544 = vmatpush3.bf16.msra.mxu0 %v2543_v11 }
 0x34a   :  { %2545 = vmatprep.subr.bf16.mxu0 %v2713_v7 }
 0x34d   :  { %2547 = vmatpush3.bf16.msra.mxu0 %v2546_v54 }
 0x34e   :  { %2548 = vmatprep.subr.bf16.mxu0 %v2713_v7 }
 0x351   :  { %2550 = vmatpush3.bf16.msra.mxu0 %v2549_v46 }
 0x352   :  { %2551 = vmatprep.subr.bf16.mxu0 %v2713_v7 }
 0x355   :  { %2553 = vmatpush3.bf16.msra.mxu0 %v2552_v34 }
 0x356   :  { %2554 = vmatprep.subr.bf16.mxu0 %v2713_v7 }
 0x358   :  { %2207 = vmatmul.mubr.f32.vlgmr.msra.gmra.mrb[2].mxu0 %v1028_v52 }
 0x359   :  { %2556 = vmatpush3.bf16.msra.mxu0 %v3054_v32  ;;  %2241 = vmatprep.mubr.msk.f32.mxu0 %vm2714_vm0, %v2715_v23 }
 0x35a   :  { %2557 = vmatprep.subr.bf16.mxu0 %v2713_v7 }
 0x35d   :  { %2559 = vmatpush3.bf16.msra.mxu0 %v3062_v16 }
 0x35e   :  { %2560 = vmatprep.subr.bf16.mxu0 %v2713_v7 }
 0x361   :  { %2562 = vmatpush3.bf16.msra.mxu0 %v3085_v29 }
 0x362   :  { %2563 = vmatprep.subr.bf16.mxu0 %v2713_v7 }
 0x365   :  { %2565 = vmatpush3.bf16.msra.mxu0 %v3093_v22 }
 0x366   :  { %2566 = vmatprep.subr.bf16.mxu0 %v2713_v7 }
 0x369   :  { %2568 = vmatpush3.bf16.msra.mxu0 %v3101_v53 }
 0x36a   :  { %2569 = vmatprep.subr.bf16.mxu0 %v2713_v7 }
 0x36d   :  { %2571 = vmatpush3.bf16.msra.mxu0 %v3201_v62 }
 0x36e   :  { %2572 = vmatprep.subr.bf16.mxu0 %v2713_v7 }
 0x371   :  { %2574 = vmatpush3.bf16.msra.mxu0 %v3205_v30 }
 0x372   :  { %2575 = vmatprep.subr.bf16.mxu0 %v2713_v7 }
 0x375   :  { %2577 = vmatpush3.bf16.msra.mxu0 %v3211_v21 }
 0x376   :  { %2578 = vmatprep.subr.bf16.mxu0 %v2713_v7 }
 0x378   :  { %2242 = vmatmul.mubr.f32.vlgmr.msra.gmra.mrb[2].mxu0 %v1029_v49 }
 0x379   :  { %2580 = vmatpush3.bf16.msra.mxu0 %v2579_v40  ;;  %2276 = vmatprep.mubr.msk.f32.mxu0 %vm2714_vm0, %v2715_v23 }
 0x37a   :  { %2581 = vmatprep.subr.bf16.mxu0 %v2713_v7 }
 0x37d   :  { %2583 = vmatpush3.bf16.msra.mxu0 %v2582_v47 }
 0x37e   :  { %2584 = vmatprep.subr.bf16.mxu0 %v2713_v7 }
 0x381   :  { %2586 = vmatpush3.bf16.msra.mxu0 %v2585_v31 }
 0x382   :  { %2587 = vmatprep.subr.bf16.mxu0 %v2713_v7 }
 0x385   :  { %2589 = vmatpush3.bf16.msra.mxu0 %v2588_v15 }
 0x386   :  { %2590 = vmatprep.subr.bf16.mxu0 %v2713_v7 }
 0x389   :  { %2592 = vmatpush3.bf16.msra.mxu0 %v2591_v24 }
 0x38a   :  { %2593 = vmatprep.subr.bf16.mxu0 %v2713_v7 }
 0x38d   :  { %2595 = vmatpush3.bf16.msra.mxu0 %v2594_v8 }
 0x38e   :  { %2596 = vmatprep.subr.bf16.mxu0 %v2713_v7 }
 0x391   :  { %2598 = vmatpush3.bf16.msra.mxu0 %v2597_v17 }
 0x392   :  { %2599 = vmatprep.subr.bf16.mxu0 %v2713_v7 }
 0x395   :  { %2601 = vmatpush3.bf16.msra.mxu0 %v2600_v4 }
 0x396   :  { %2602 = vmatprep.subr.bf16.mxu0 %v2713_v7 }
 0x398   :  { %2277 = vmatmul.mubr.f32.vlgmr.msra.gmra.mrb[2].mxu0 %v3307_v63 }
 0x399   :  { %2604 = vmatpush3.bf16.msra.mxu0 %v3054_v32  ;;  %2311 = vmatprep.mubr.msk.f32.mxu0 %vm2714_vm0, %v2715_v23  ;;  %v1636_v23 = vld [vmem:[%s3431_s5] ss:$0 sm:$0xff] }
 0x39a   :  { %2605 = vmatprep.subr.bf16.mxu0 %v2713_v7 }
 0x39d   :  { %2607 = vmatpush3.bf16.msra.mxu0 %v3062_v16 }
 0x39e   :  { %2608 = vmatprep.subr.bf16.mxu0 %v2713_v7 }
 0x3a1   :  { %2610 = vmatpush3.bf16.msra.mxu0 %v3085_v29 }
 0x3a2   :  { %2611 = vmatprep.subr.bf16.mxu0 %v2713_v7 }
 0x3a5   :  { %2613 = vmatpush3.bf16.msra.mxu0 %v3093_v22 }
 0x3a6   :  { %2614 = vmatprep.subr.bf16.mxu0 %v2713_v7 }
 0x3a9   :  { %2616 = vmatpush3.bf16.msra.mxu0 %v3101_v53 }
 0x3aa   :  { %2617 = vmatprep.subr.bf16.mxu0 %v2713_v7 }
 0x3ad   :  { %2619 = vmatpush3.bf16.msra.mxu0 %v3201_v62 }
 0x3ae   :  { %2620 = vmatprep.subr.bf16.mxu0 %v2713_v7 }
 0x3b1   :  { %2622 = vmatpush3.bf16.msra.mxu0 %v3205_v30 }
 0x3b2   :  { %2623 = vmatprep.subr.bf16.mxu0 %v2713_v7 }
 0x3b5   :  { %2625 = vmatpush3.bf16.msra.mxu0 %v3211_v21 }
 0x3b8   :  { %2312 = vmatmul.mubr.f32.vlgmr.msra.gmra.mrb[2].mxu0 %v3307_v63 }
 0x48b   :  { %v1583_v16 = vpop.f32.mrb[2].mxu0 }
 0x48c   :  { %v2626_v32 = vadd.f32 %v1636_v23, %v1583_v16  ;;  %v2313_v29 = vpop.f32.mrb[3].mxu0 }
 0x48e   :  { %1587 = vst [vmem:[#allocation7] sm:$0xff] %v2626_v32 }
 0x48f   :  { %2694 = shalt.err (!%p2691_p12)
}
 0x490   :  { %s2695_s28 = scalar_lea.hbm %s3432_s6, 128 }
 0x491   :  { %p2696_p13 = scmp.ne.s32.totalorder %s3432_s6, %s2695_s28  ;;  %p2699_p0 = scmp.lt.u32.totalorder %s2695_s28, %s3432_s6 }
 0x493   :  { %p2701_p1 = pnand %p2699_p0, %p2696_p13 }
 0x495   :  { %2704 = shalt.err (!%p2701_p1)
}
 0x496   :  { %1597 = dma.vmem_to_hbm [thread:$0]  %s1595_s24, 128, %s3432_s6, [#allocation6]  }
 0x497   :  { %2707 = dma.done.wait [#allocation6], 128  }
 0x498   :  { %2708 = vsyncadd [#allocation6], 4294967168 }
 0x499   :  { %1601 = vsyncpa [#allocation5], 1 }
 0x49a   :  { %1602 = vsyncpa [#allocation6], 1 }

</bundles_post_ra>
